<compile_context>
chip_gen: v7x
topology: tpu7x:2x2x1
jax: 0.10.0
libtpu: 0.0.40
codegen_flags: <defaults>
</compile_context>

<pallas_src>
import jax
import jax.numpy as jnp
from jax.experimental import pallas as pl
from jax.experimental.pallas import tpu as pltpu

EPS = 1e-5


# --------------------------------------------------------------------------
# Kernels
# --------------------------------------------------------------------------
def _row_stats_kernel(x_ref, sum_ref, sq_ref):
    """Per-row sum and sum-of-squares (single pass, f32 accumulation)."""
    x = x_ref[...].astype(jnp.float32)
    sum_ref[...] = jnp.sum(x, axis=-1, keepdims=True)
    sq_ref[...] = jnp.sum(x * x, axis=-1, keepdims=True)


def _scale_bias_relu_kernel(x_ref, scale_ref, bias_ref, o_ref):
    """y = relu(x * scale_row + bias_row)."""
    x = x_ref[...].astype(jnp.float32)
    y = x * scale_ref[...] + bias_ref[...]
    o_ref[...] = jnp.maximum(y, 0.0).astype(o_ref.dtype)


# --------------------------------------------------------------------------
# Tiling helper
# --------------------------------------------------------------------------
def _pick_block_rows(n_rows, n_cols, itemsize, target_bytes=2 * 1024 * 1024):
    """Row-block size: ~target_bytes per (block_rows, n_cols) buffer,
    a multiple of 8 (sublane), preferring an exact divisor of n_rows."""
    max_rows = max(1, target_bytes // max(1, n_cols * itemsize))
    if max_rows >= n_rows:
        return n_rows                      # whole slab fits in one tile
    cap = max(8, (max_rows // 8) * 8)
    for br in range(cap, 7, -8):           # largest multiple-of-8 divisor <= cap
        if n_rows % br == 0:
            return br
    return cap                             # non-dividing: Pallas pads last block


# --------------------------------------------------------------------------
# Forward
# --------------------------------------------------------------------------
def ibn_forward(x, in_gamma, in_beta, bn_gamma, bn_beta, half):
    """IBN forward.  x: (N, C, H, W) NCHW, C = planes.

    Matches PyTorch: InstanceNorm2d(affine=True)+ReLU on channels [:half],
    training-mode BatchNorm2d (batch statistics)+ReLU on channels [half:],
    channel concat.  (Running-stat updates are a training side effect and do
    not affect the forward output.)
    """
    N, C, H, W = x.shape
    c_bn = C - half
    L = H * W
    R = N * C

    x2d = x.reshape(R, L)                               # free for NCHW-contiguous
    itemsize = jnp.dtype(x.dtype).itemsize
    block_r = _pick_block_rows(R, L, itemsize)
    grid = (pl.cdiv(R, block_r),)

    # ---- Pass A: per-row sum / sumsq -------------------------------------
    sums, sqs = pl.pallas_call(
        _row_stats_kernel,
        out_shape=(jax.ShapeDtypeStruct((R, 1), jnp.float32),
                   jax.ShapeDtypeStruct((R, 1), jnp.float32)),
        grid=grid,
        in_specs=[pl.BlockSpec((block_r, L), lambda i: (i, 0))],
        out_specs=(pl.BlockSpec((block_r, 1), lambda i: (i, 0)),
                   pl.BlockSpec((block_r, 1), lambda i: (i, 0))),
        compiler_params=pltpu.CompilerParams(
            dimension_semantics=("parallel",)),
        cost_estimate=pl.CostEstimate(
            flops=3 * R * L, transcendentals=0,
            bytes_accessed=R * L * itemsize + 8 * R),
    )(x2d)

    # ---- Tiny glue: fold stats + affine params into per-row scale/bias ---
    sums = sums.reshape(N, C)
    sqs = sqs.reshape(N, C)

    # InstanceNorm half: stats per (n, c) over H*W.
    cnt_in = jnp.float32(L)
    mean_in = sums[:, :half] / cnt_in                                # (N, half)
    var_in = sqs[:, :half] / cnt_in - mean_in * mean_in              # E[x^2]-m^2
    inv_in = jax.lax.rsqrt(var_in + EPS)
    scale_in = inv_in * in_gamma[None, :].astype(jnp.float32)
    bias_in = in_beta[None, :].astype(jnp.float32) - mean_in * scale_in

    # BatchNorm half: stats per channel over N*H*W (batch statistics).
    cnt_bn = jnp.float32(N * L)
    mean_bn = jnp.sum(sums[:, half:], axis=0) / cnt_bn               # (c_bn,)
    var_bn = jnp.sum(sqs[:, half:], axis=0) / cnt_bn - mean_bn * mean_bn
    inv_bn = jax.lax.rsqrt(var_bn + EPS)
    scale_bn = inv_bn * bn_gamma.astype(jnp.float32)
    bias_bn = bn_beta.astype(jnp.float32) - mean_bn * scale_bn
    scale_bn = jnp.broadcast_to(scale_bn[None, :], (N, c_bn))
    bias_bn = jnp.broadcast_to(bias_bn[None, :], (N, c_bn))

    scale = jnp.concatenate([scale_in, scale_bn], axis=1).reshape(R, 1)
    bias = jnp.concatenate([bias_in, bias_bn], axis=1).reshape(R, 1)

    # ---- Pass B: normalize + affine + ReLU, directly in NCHW row layout --
    out2d = pl.pallas_call(
        _scale_bias_relu_kernel,
        out_shape=jax.ShapeDtypeStruct((R, L), x.dtype),
        grid=grid,
        in_specs=[pl.BlockSpec((block_r, L), lambda i: (i, 0)),
                  pl.BlockSpec((block_r, 1), lambda i: (i, 0)),
                  pl.BlockSpec((block_r, 1), lambda i: (i, 0))],
        out_specs=pl.BlockSpec((block_r, L), lambda i: (i, 0)),
        compiler_params=pltpu.CompilerParams(
            dimension_semantics=("parallel",)),
        cost_estimate=pl.CostEstimate(
            flops=3 * R * L, transcendentals=0,
            bytes_accessed=2 * R * L * itemsize + 8 * R),
    )(x2d, scale, bias)

    return out2d.reshape(N, C, H, W)


# --------------------------------------------------------------------------
# Pure-JAX reference mirroring the PyTorch module
# --------------------------------------------------------------------------
def _reference(x, in_gamma, in_beta, bn_gamma, bn_beta, half):
    x = x.astype(jnp.float32)
    x1, x2 = x[:, :half], x[:, half:]
    # InstanceNorm2d(affine=True) + ReLU
    m1 = jnp.mean(x1, axis=(2, 3), keepdims=True)
    v1 = jnp.mean((x1 - m1) ** 2, axis=(2, 3), keepdims=True)
    o1 = (x1 - m1) / jnp.sqrt(v1 + EPS)
    o1 = o1 * in_gamma[None, :, None, None] + in_beta[None, :, None, None]
    o1 = jnp.maximum(o1, 0.0)
    # BatchNorm2d (training-mode batch stats) + ReLU
    m2 = jnp.mean(x2, axis=(0, 2, 3), keepdims=True)
    v2 = jnp.mean((x2 - m2) ** 2, axis=(0, 2, 3), keepdims=True)
    o2 = (x2 - m2) / jnp.sqrt(v2 + EPS)
    o2 = o2 * bn_gamma[None, :, None, None] + bn_beta[None, :, None, None]
    o2 = jnp.maximum(o2, 0.0)
    return jnp.concatenate([o1, o2], axis=1)


if __name__ == "__main__":
    key = jax.random.PRNGKey(0)
    N, planes, H, W = 2, 4, 16, 16
    half = planes // 2          # InstanceNorm channels
    c_bn = planes - half        # BatchNorm channels

    kx, kg1, kb1, kg2, kb2 = jax.random.split(key, 5)
    x = jax.random.normal(kx, (N, planes, H, W), dtype=jnp.float32)

    # Non-trivial affine params (PyTorch default ones/zeros, perturbed to
    # exercise the scale/shift path).
    in_gamma = 1.0 + 0.1 * jax.random.normal(kg1, (half,), dtype=jnp.float32)
    in_beta = 0.1 * jax.random.normal(kb1, (half,), dtype=jnp.float32)
    bn_gamma = 1.0 + 0.1 * jax.random.normal(kg2, (c_bn,), dtype=jnp.float32)
    bn_beta = 0.1 * jax.random.normal(kb2, (c_bn,), dtype=jnp.float32)

    out = ibn_forward(x, in_gamma, in_beta, bn_gamma, bn_beta, half)
    out = jax.block_until_ready(out)

    ref = _reference(x, in_gamma, in_beta, bn_gamma, bn_beta, half)
    assert out.shape == (N, planes, H, W)
    assert jnp.allclose(out, ref, atol=1e-4, rtol=1e-4), "mismatch vs reference"

    print("KERNEL_OK")
</pallas_src>

<mosaic_0001>
module attributes {stable_mosaic.version = 11 : i64} {
  func.func @_row_stats_kernel(%arg0: i32, %arg1: memref<8x256xf32, #tpu.memory_space<vmem>>, %arg2: memref<8x1xf32, #tpu.memory_space<vmem>>, %arg3: memref<8x1xf32, #tpu.memory_space<vmem>>) attributes {dimension_semantics = [#tpu.dimension_semantics<parallel>], iteration_bounds = array<i64: 1>, scalar_prefetch = 0 : i64, scratch_operands = 0 : i64, tpu.core_type = #tpu.core_type<tc>, window_params = [{transform_indices = @transform_0, window_bounds = array<i64: 8, 256>}, {transform_indices = @transform_1, window_bounds = array<i64: 8, 1>}, {transform_indices = @transform_2, window_bounds = array<i64: 8, 1>}]} {
    %c0 = arith.constant 0 : index
    %c0_0 = arith.constant 0 : index
    %0 = vector.load %arg1[%c0, %c0_0] : memref<8x256xf32, #tpu.memory_space<vmem>>, vector<8x256xf32>
    %cst = arith.constant dense<0.000000e+00> : vector<8xf32>
    %1 = vector.multi_reduction <add>, %0, %cst [1] : vector<8x256xf32> to vector<8xf32>
    %2 = vector.shape_cast %1 : vector<8xf32> to vector<8x1xf32>
    %c0_1 = arith.constant 0 : index
    %c0_2 = arith.constant 0 : index
    %3 = vector.load %arg2[%c0_1, %c0_2] : memref<8x1xf32, #tpu.memory_space<vmem>>, vector<8x1xf32>
    tpu.vector_store %arg2[%c0_1, %c0_2], %2 {strides = array<i32>} : memref<8x1xf32, #tpu.memory_space<vmem>>, vector<8x1xf32>,
    %4 = arith.mulf %0, %0 : vector<8x256xf32>
    %cst_3 = arith.constant dense<0.000000e+00> : vector<8xf32>
    %5 = vector.multi_reduction <add>, %4, %cst_3 [1] : vector<8x256xf32> to vector<8xf32>
    %6 = vector.shape_cast %5 : vector<8xf32> to vector<8x1xf32>
    %c0_4 = arith.constant 0 : index
    %c0_5 = arith.constant 0 : index
    %7 = vector.load %arg3[%c0_4, %c0_5] : memref<8x1xf32, #tpu.memory_space<vmem>>, vector<8x1xf32>
    tpu.vector_store %arg3[%c0_4, %c0_5], %6 {strides = array<i32>} : memref<8x1xf32, #tpu.memory_space<vmem>>, vector<8x1xf32>,
    return
  }
  func.func @transform_0(%arg0: i32) -> (i32, i32) {
    %c0_i32 = arith.constant 0 : i32
    %c0_i32_0 = arith.constant 0 : i32
    return %arg0, %c0_i32 : i32, i32
  }
  func.func @transform_1(%arg0: i32) -> (i32, i32) {
    %c0_i32 = arith.constant 0 : i32
    %c0_i32_0 = arith.constant 0 : i32
    return %arg0, %c0_i32 : i32, i32
  }
  func.func @transform_2(%arg0: i32) -> (i32, i32) {
    %c0_i32 = arith.constant 0 : i32
    %c0_i32_0 = arith.constant 0 : i32
    return %arg0, %c0_i32 : i32, i32
  }
}

</mosaic_0001>

<bundles_post_ra>
// kernel: tpu_custom_call.1
= control target key start
LH: loop header
LB: loop body
LE: loop exit
PB: predicated region body
PF: predicated region fallthrough
CT: control target
= control target key end

     0   :  { %8 = vsyncpa [#allocation3], 0  ;;  %s69_s9 = smov [#allocation2]   ;;  %s103_s0 = inlined_call_operand.hbm [shape: f32[8,256], index: 0, kind: input, shape index: {}]   ;;  %s104_s1 = inlined_call_operand.vmem [shape: f32[8,1], index: 1, kind: output, shape index: {0}]   ;;  %s105_s2 = inlined_call_operand.vmem [shape: f32[8,1], index: 2, kind: output, shape index: {1}]  }
   0x1   :  { %s15_s10 = sshll.u32 %s69_s9, 4  ;;  %s45_s13 = scalar_lea.hbm %s103_s0, 256  ;;  %s16_s10 = int_to_ptr.vmem [resolvable:$true] %s15_s10 }
   0x2   :  { %p46_p0 = scmp.ne.s32.totalorder %s103_s0, %s45_s13  ;;  %p49_p1 = scmp.lt.u32.totalorder %s45_s13, %s103_s0 }
   0x4   :  { %p51_p2 = pnand %p49_p1, %p46_p0 }
   0x6   :  { %54 = shalt.err (!%p51_p2)
}
   0x7   :  { %s55_s18 = scalar_lea.vmem %s16_s10, 256  ;;  %p60_p4 = scmp.lt.s32.totalorder %s16_s10, %s16_s10 }
   0x8   :  { %p56_p3 = scmp.ne.s32.totalorder %s16_s10, %s55_s18  ;;  %p61_p5 = scmp.lt.s32.totalorder %s55_s18, %s55_s18 }
   0xa   :  { %p62_p6 = por %p61_p5, %p60_p4 }
   0xc   :  { %p63_p7 = pnand %p62_p6, %p56_p3 }
   0xe   :  { %66 = shalt.err (!%p63_p7)
}
   0xf   :  { %18 = dma.hbm_to_vmem [thread:$0]  %s103_s0, 256, %s16_s10, [#allocation3]  }
  0x10   :  { %67 = dma.done.wait [#allocation3], 256  }
  0x11   :  { %68 = vsyncadd [#allocation3], 4294967040  ;;  %v22_v0 = vld [vmem:[#allocation2] sm:$0xff]  ;;  %v23_v1 = vld [vmem:[#allocation2 + $0x8] sm:$0xff]  ;;  %vm27_vm0 = vcmask 7168  }
  0x12   :  { %v24_v2 = vadd.f32 %v23_v1, %v22_v0  ;;  %v29_v3 = vmul.f32 %v22_v0, %v22_v0  ;;  %v30_v4 = vmul.f32 %v23_v1, %v23_v1 }
  0x14   :  { %25 = vadd.xlane.f32.xlu0 %v24_v2  ;;  %v31_v5 = vadd.f32 %v30_v4, %v29_v3 }
  0x18   :  { %32 = vadd.xlane.f32.xlu0 %v31_v5 }
  0xa1   :  { %v26_v6 = vpop.xlane.xlu0 %25 }
  0xa2   :  { %28 = vst.msk [vmem:[%s104_s1] sm:$0xff] %vm27_vm0, %v26_v6 }
  0xa5   :  { %v33_v7 = vpop.xlane.xlu0 %32 }
  0xa6   :  { %34 = vst.msk [vmem:[%s105_s2] sm:$0xff] %vm27_vm0, %v33_v7 }
  0xa7   :  { %43 = vsyncpa [#allocation3], 1 }

</bundles_post_ra>
